<compile_context>
chip_gen: v5e
topology: v5e:2x2
jax: 0.10.0
libtpu: 0.0.40
codegen_flags: <defaults>
</compile_context>

<pallas_src>
import functools

import jax
import jax.numpy as jnp
import numpy as np
from jax import lax
from jax.experimental import pallas as pl
from jax.experimental.pallas import tpu as pltpu

_EPS = 1e-12  # matches torch.nn.functional.normalize default


def _lsh_kernel(x_ref, w_ref, o_ref, *, scale_after):
    """L2-normalize each pixel's channel vector, then project with R.

    Layout: channels on sublanes, pixels on lanes -> lane-dense loads/stores.
      x_ref: (C, T)    tile of pixels (channels-first), native dtype
      w_ref: (OUT, C)  full projection matrix R (unit-norm rows), native dtype
      o_ref: (OUT, T)  cosine similarities
    """
    x = x_ref[...]                                       # (C, T) native dtype (MXU input)
    xf = x.astype(jnp.float32)
    ssq = jnp.sum(xf * xf, axis=0, keepdims=True)        # (1, T) cross-sublane (XLU)
    # 1/max(||x||, eps) == rsqrt(max(ssq, eps^2)); single EUP op, keeps the
    # F.normalize eps clamp semantics (zero vectors normalize to zero).
    inv = lax.rsqrt(jnp.maximum(ssq, _EPS * _EPS))       # (1, T)
    w = w_ref[...]
    if scale_after:
        # OUT <= C: scale the (OUT, T) accumulator instead of the (C, T) tile.
        acc = jnp.dot(w, x, preferred_element_type=jnp.float32)
        o_ref[...] = (acc * inv).astype(o_ref.dtype)
    else:
        xn = (xf * inv).astype(x.dtype)                  # keep MXU operands narrow
        o_ref[...] = jnp.dot(w, xn, preferred_element_type=jnp.float32).astype(o_ref.dtype)


def _pick_tile(HW, C, OUT, in_item, out_item):
    """Pixel-tile width: ~2 MiB HBM traffic/step, <=~12 MiB double-buffered VMEM,
    multiple of 128 lanes (unmasked vst), ragged tail allowed."""
    target_step_bytes = 2 << 20
    hbm_per_pix = C * in_item + OUT * out_item
    vmem_per_pix = 2 * hbm_per_pix                       # double-buffered in + out tiles
    t = target_step_bytes // hbm_per_pix
    t = min(t, (12 << 20) // vmem_per_pix)
    if HW <= 128:
        return int(HW)                                   # full dim: exempt from lane rule
    t = min(t, HW)
    t = max(128, (t // 128) * 128)                       # lane-dense stores
    return int(t)


@jax.jit
def lsh_forward(x_nchw, weight):
    """LSH forward (kernel_size=1, concatenate=False).

    x_nchw: (N, C, H, W); weight: (OUT, C) unit-norm rows.  Returns (N, OUT, H, W).
    """
    N, C, H, W = x_nchw.shape
    OUT = weight.shape[0]
    HW = H * W

    # NCHW -> (N, C, H*W): free reshape, no transpose / extra HBM pass.
    x3d = x_nchw.reshape(N, C, HW)
    # Keep the weight in the input dtype (bf16 inputs -> bf16 weight in HBM).
    w = weight.astype(x_nchw.dtype)

    in_item = x3d.dtype.itemsize
    out_item = in_item                                   # output follows input dtype
    t = _pick_tile(HW, C, OUT, in_item, out_item)
    grid_hw = pl.cdiv(HW, t)

    scale_after = OUT <= C

    # Advisory cost: this custom call is pure HBM bandwidth.
    cost = pl.CostEstimate(
        flops=2 * N * HW * OUT * C,
        transcendentals=N * HW,
        bytes_accessed=N * HW * (C * in_item + OUT * out_item) + OUT * C * w.dtype.itemsize,
    )

    # Scoped-VMEM request derived from the real footprint (double-buffered x/out
    # tiles + single-buffered weight + headroom); never below the 16 MiB v5e
    # default, never above 48 MiB (safe within v7x's 64 MiB physical VMEM).
    vmem_need = 2 * t * (C * in_item + OUT * out_item) + OUT * C * w.dtype.itemsize + (2 << 20)
    vmem_limit = int(min(max(vmem_need, 16 << 20), 48 << 20))

    out3d = pl.pallas_call(
        functools.partial(_lsh_kernel, scale_after=scale_after),
        out_shape=jax.ShapeDtypeStruct((N, OUT, HW), x_nchw.dtype),
        grid_spec=pltpu.PrefetchScalarGridSpec(
            num_scalar_prefetch=0,
            grid=(N, grid_hw),
            in_specs=[
                # (C, t) pixel tile; batch dim squeezed out of the kernel ref.
                pl.BlockSpec((None, C, t), lambda n, i: (n, 0, i)),
                # Full projection matrix, constant index_map -> resident; one buffer.
                pl.BlockSpec((OUT, C), lambda n, i: (0, 0),
                             pipeline_mode=pl.Buffered(1)),
            ],
            out_specs=pl.BlockSpec((None, OUT, t), lambda n, i: (n, 0, i)),
        ),
        compiler_params=pltpu.CompilerParams(
            dimension_semantics=("parallel", "parallel"),
            vmem_limit_bytes=vmem_limit,
        ),
        cost_estimate=cost,
    )(x3d, w)

    # (N, OUT, H*W) -> (N, OUT, H, W): free reshape, matches torch.conv2d NCHW.
    return out3d.reshape(N, OUT, H, W)


def make_lsh_weight(key, in_channels, out_channels):
    """Deterministic analogue of LSH.__init__ (kernel_size=1, concatenate=False).

    w = randn(out, in, 1, 1);  w = F.normalize(w, dim=[1,2,3])  -> (out, in)
    """
    w = jax.random.normal(key, (out_channels, in_channels), dtype=jnp.float32)
    norm = jnp.sqrt(jnp.sum(w * w, axis=1, keepdims=True))
    return w / jnp.maximum(norm, _EPS)


def _reference(x_nchw, weight):
    """Pure-JAX reference of the PyTorch forward (kernel_size=1 path)."""
    norm = jnp.sqrt(jnp.sum(x_nchw * x_nchw, axis=1, keepdims=True))
    xn = x_nchw / jnp.maximum(norm, _EPS)
    # 1x1 conv == einsum over channels
    return jnp.einsum("nchw,oc->nohw", xn, weight)


if __name__ == "__main__":
    key = jax.random.PRNGKey(0)
    kx1, kw1, kx2, kw2 = jax.random.split(key, 4)

    # Case 1: OUT > C  (scale-before-matmul path), HW multiple of 128.
    N, C_IN, C_OUT, H, W = 2, 4, 8, 16, 16
    x1 = jax.random.normal(kx1, (N, C_IN, H, W), dtype=jnp.float32)
    w1 = make_lsh_weight(kw1, C_IN, C_OUT)
    out1 = jax.block_until_ready(lsh_forward(x1, w1))
    ref1 = jax.block_until_ready(_reference(x1, w1))
    assert out1.shape == (N, C_OUT, H, W), out1.shape
    np.testing.assert_allclose(np.asarray(out1), np.asarray(ref1), rtol=1e-5, atol=1e-5)

    # Case 2: OUT < C  (scale-after-matmul path), ragged HW tail (144 = 128 + 16).
    N2, C2_IN, C2_OUT, H2, W2 = 1, 8, 4, 12, 12
    x2 = jax.random.normal(kx2, (N2, C2_IN, H2, W2), dtype=jnp.float32)
    w2 = make_lsh_weight(kw2, C2_IN, C2_OUT)
    out2 = jax.block_until_ready(lsh_forward(x2, w2))
    ref2 = jax.block_until_ready(_reference(x2, w2))
    assert out2.shape == (N2, C2_OUT, H2, W2), out2.shape
    np.testing.assert_allclose(np.asarray(out2), np.asarray(ref2), rtol=1e-5, atol=1e-5)

    print("KERNEL_OK")
</pallas_src>

<mosaic_0001>
module attributes {stable_mosaic.version = 11 : i64} {
  func.func @_lsh_kernel(%arg0: i32, %arg1: i32, %arg2: memref<1x4x256xf32, #tpu.memory_space<vmem>>, %arg3: memref<8x4xf32, #tpu.memory_space<vmem>>, %arg4: memref<1x8x256xf32, #tpu.memory_space<vmem>>) attributes {dimension_semantics = [#tpu.dimension_semantics<parallel>, #tpu.dimension_semantics<parallel>], iteration_bounds = array<i64: 2, 1>, scalar_prefetch = 0 : i64, scratch_operands = 0 : i64, tpu.core_type = #tpu.core_type<tc>, window_params = [{transform_indices = @transform_0, window_bounds = array<i64: 1, 4, 256>}, {pipeline_mode = #tpu.pipeline_mode<synchronous>, transform_indices = @transform_1, window_bounds = array<i64: 8, 4>}, {transform_indices = @transform_2, window_bounds = array<i64: 1, 8, 256>}]} {
    %c0 = arith.constant 0 : index
    %c0_0 = arith.constant 0 : index
    %c0_1 = arith.constant 0 : index
    %0 = vector.load %arg2[%c0, %c0_0, %c0_1] : memref<1x4x256xf32, #tpu.memory_space<vmem>>, vector<1x4x256xf32>
    %1 = vector.shape_cast %0 : vector<1x4x256xf32> to vector<4x256xf32>
    %2 = arith.mulf %1, %1 : vector<4x256xf32>
    %cst = arith.constant dense<0.000000e+00> : vector<256xf32>
    %3 = vector.multi_reduction <add>, %2, %cst [0] : vector<4x256xf32> to vector<256xf32>
    %4 = vector.shape_cast %3 : vector<256xf32> to vector<1x256xf32>
    %cst_2 = arith.constant 1.000000e-24 : f32
    %5 = vector.broadcast %cst_2 : f32 to vector<1x256xf32>
    %6 = arith.maximumf %4, %5 : vector<1x256xf32>
    %7 = math.rsqrt %6 : vector<1x256xf32>
    %c0_3 = arith.constant 0 : index
    %c0_4 = arith.constant 0 : index
    %8 = vector.load %arg3[%c0_3, %c0_4] : memref<8x4xf32, #tpu.memory_space<vmem>>, vector<8x4xf32>
    %9 = vector.broadcast %7 : vector<1x256xf32> to vector<4x256xf32>
    %10 = arith.mulf %1, %9 : vector<4x256xf32>
    %cst_5 = arith.constant dense<0.000000e+00> : vector<8x256xf32>
    %11 = tpu.matmul %8, %10, %cst_5 {dimension_numbers = #tpu.dot_dimension_numbers<[1], [0], [0], [1], [0, 0, 1, 1], [], []>} : vector<8x4xf32>, vector<4x256xf32>, vector<8x256xf32> -> vector<8x256xf32>
    %c0_6 = arith.constant 0 : index
    %c0_7 = arith.constant 0 : index
    %c0_8 = arith.constant 0 : index
    %12 = vector.load %arg4[%c0_6, %c0_7, %c0_8] : memref<1x8x256xf32, #tpu.memory_space<vmem>>, vector<1x8x256xf32>
    %13 = vector.shape_cast %12 : vector<1x8x256xf32> to vector<8x256xf32>
    %14 = vector.shape_cast %11 : vector<8x256xf32> to vector<1x8x256xf32>
    tpu.vector_store %arg4[%c0_6, %c0_7, %c0_8], %14 {strides = array<i32>} : memref<1x8x256xf32, #tpu.memory_space<vmem>>, vector<1x8x256xf32>,
    return
  }
  func.func @transform_0(%arg0: i32, %arg1: i32) -> (i32, i32, i32) {
    %c0_i32 = arith.constant 0 : i32
    %c0_i32_0 = arith.constant 0 : i32
    return %arg0, %c0_i32, %arg1 : i32, i32, i32
  }
  func.func @transform_1(%arg0: i32, %arg1: i32) -> (i32, i32) {
    %c0_i32 = arith.constant 0 : i32
    %c0_i32_0 = arith.constant 0 : i32
    %c0_i32_1 = arith.constant 0 : i32
    return %c0_i32, %c0_i32_0 : i32, i32
  }
  func.func @transform_2(%arg0: i32, %arg1: i32) -> (i32, i32, i32) {
    %c0_i32 = arith.constant 0 : i32
    %c0_i32_0 = arith.constant 0 : i32
    return %arg0, %c0_i32, %arg1 : i32, i32, i32
  }
}

</mosaic_0001>

<bundles_post_ra>
// kernel: lsh_forward.1
= control target key start
LH: loop header
LB: loop body
LE: loop exit
PB: predicated region body
PF: predicated region fallthrough
CT: control target
= control target key end

     0   :  { %s460_s9 = smov 0   ;;  %s462_s10 = smov 0   ;;  %s505_s0 = inlined_call_operand.vmem [shape: f32[2,4,256], index: 0, kind: input, shape index: {}]   ;;  %s506_s1 = inlined_call_operand.vmem [shape: f32[8,4], index: 1, kind: input, shape index: {}]   ;;  %s507_s2 = inlined_call_operand.vmem [shape: f32[2,8,256], index: 2, kind: output, shape index: {}]  }
   0x1   :  { %s464_s11 = smov 0  }
   0x2 LB: > { %s24_s12 = sadd.s32 1, %s439_s10  ;;  %p380_p0 = scmp.ge.s32.totalorder %s443_s11, 1  ;;  %s443_s11 = sphi %s464_s11, %s12_s11   ;;  %s439_s10 = sphi %s462_s10, %s509_s10   ;;  %s435_s9 = sphi %s460_s9, %s508_s9  }
   0x3   : > { %p26_p1 = scmp.ge.s32.totalorder %s24_s12, 2  ;;  %p133_p2 = scmp.lt.s32.totalorder %s443_s11, 3 }
   0x5   : > { %s511_s12 = smov (%p26_p1, %s24_s12), 0  ;;  %p134_p3 = pnand %p380_p0, %p133_p2 }
   0x6   : > { %p164_p4 = scmp.lt.s32.totalorder (!%p134_p3), %s435_s9, 1 }
   0x7   : > { %137 = sbr.rel (%p134_p3) target bundleno = 202 (0xca), region = 28 }
   0xc   : > { %s513_s9 = smov (!%p164_p4, %s435_s9), 1  ;;  %vm191_vm0 = vcmask 1043456   ;;  %v228_v37 = vld [vmem:[%s506_s1] sm:$0xff]  ;;  %vm239_vm7 = vcmask 31744  }
   0xd   : > { %s391_s13 = sshll.u32 %s513_s9, 3  ;;  %s392_s19 = sshll.u32 %s513_s9, 4 }
   0xe   : > { %s171_s16 = scalar_lea.vmem %s505_s0, %s391_s13  ;;  %s181_s22 = scalar_lea.vmem %s507_s2, %s392_s19 }
   0xf   : > { %v183_v0 = vld [vmem:[%s171_s16] sm:$0xff] }
  0x10   : > { %v184_v1 = vmul.f32 %v183_v0, %v183_v0 }
  0x12   : > { %186 = vst [vmem:[#allocation1] ss:$2 sm:$0xff] %v184_v1 }
  0x19   : > { %v187_v2 = vld.sshfl [vmem:[#allocation1] sm:$0xff pattern:$0x75316420]  ;;  %v188_v3 = vld.sshfl [vmem:[#allocation1 + $0x8] sm:$0xff pattern:$0x75316420] }
  0x1a   : > { %v192_v4 = vsel %vm191_vm0, %v187_v2, 0.0  ;;  %v199_v5 = vsel %vm191_vm0, %v188_v3, 0.0 }
  0x1b   : > { %v193_v6 = vrot.slane %v192_v4, 4  ;;  %v200_v7 = vrot.slane %v199_v5, 4 }
  0x1d   : > { %v194_v8 = vadd.f32 %v193_v6, %v192_v4  ;;  %v201_v9 = vadd.f32 %v200_v7, %v199_v5 }
  0x1f   : > { %v195_v10 = vrot.slane %v194_v8, 2  ;;  %v202_v11 = vrot.slane %v201_v9, 2 }
  0x21   : > { %v196_v12 = vadd.f32 %v195_v10, %v194_v8  ;;  %v203_v13 = vadd.f32 %v202_v11, %v201_v9 }
  0x23   : > { %v197_v14 = vrot.slane %v196_v12, 1  ;;  %v204_v15 = vrot.slane %v203_v13, 1 }
  0x25   : > { %v198_v16 = vadd.f32 %v197_v14, %v196_v12  ;;  %v205_v17 = vadd.f32 %v204_v15, %v203_v13 }
  0x27   : > { %v206_v18 = vmax.f32 %v198_v16, 1e-24  ;;  %v207_v19 = vmax.f32 %v205_v17, 1e-24 }
  0x29   : > { %417 = vrsqrt.f32 %v206_v18  ;;  %vm214_vm1 = vweird.f32 %v206_v18  ;;  %vm224_vm3 = vweird.f32 %v207_v19 }
  0x2a   : > { %419 = vrsqrt.f32 %v207_v19 }
  0x2f   : > { %v418_v20 = vpop.eup %417 }
  0x30   : > { %v420_v21 = vpop.eup %419  ;;  %v209_v22 = vmul.f32 %v418_v20, %v206_v18  ;;  %vm215_vm2 = vweird.f32 %v418_v20 }
  0x31   : > { %v219_v23 = vmul.f32 %v420_v21, %v207_v19  ;;  %vm225_vm4 = vweird.f32 %v420_v21  ;;  %vm216_vm5 = vmor %vm214_vm1, %vm215_vm2 }
  0x32   : > { %v210_v24 = vmul.f32 %v418_v20, %v209_v22  ;;  %vm226_vm6 = vmor %vm224_vm3, %vm225_vm4 }
  0x33   : > { %v220_v25 = vmul.f32 %v420_v21, %v219_v23 }
  0x34   : > { %v211_v26 = vmul.f32 0.5, %v210_v24 }
  0x35   : > { %v221_v27 = vmul.f32 0.5, %v220_v25 }
  0x36   : > { %v212_v28 = vsub.f32 1.5, %v211_v26 }
  0x37   : > { %v222_v29 = vsub.f32 1.5, %v221_v27 }
  0x38   : > { %v213_v30 = vmul.f32 %v418_v20, %v212_v28 }
  0x39   : > { %v223_v31 = vmul.f32 %v420_v21, %v222_v29 }
  0x3a   : > { %v217_v32 = vsel %vm216_vm5, %v418_v20, %v213_v30 }
  0x3b   : > { %v227_v33 = vsel %vm226_vm6, %v420_v21, %v223_v31 }
  0x3c   : > { %v231_v34 = vrot.slane %v227_v33, 4 }
  0x3e   : > { %v232_v35 = vsel %vm191_vm0, %v217_v32, %v231_v34 }
  0x3f   : > { %v234_v36 = vmul.f32 %v232_v35, %v183_v0 }
  0x41   : > { %236 = vst [vmem:[#allocation1] ss:$2 sm:$0xff] %v234_v36 }
  0x48   : > { %v237_v38 = vld.sshfl [vmem:[#allocation1] sm:$0xff pattern:$0x75316420]  ;;  %v238_v39 = vld.sshfl [vmem:[#allocation1 + $0x8] sm:$0xff pattern:$0x75316420] }
  0x49   : > { %385 = vmatpush.msk.msra.mxu0 %vm191_vm0, %v237_v38  ;;  %387 = vmatpush.msk.msra.mxu1 %vm191_vm0, %v238_v39 }
  0x4a   : > { %386 = vmatmul.msk.f32.vlgmr.msra.gmra.mxu0 %vm239_vm7, %v228_v37  ;;  %388 = vmatmul.msk.f32.vlgmr.msra.gmra.mxu1 %vm239_vm7, %v228_v37 }
  0xc7   : > { %v264_v40 = vpop.f32.mrf.mxu0  ;;  %v284_v41 = vpop.f32.mrf.mxu1 }
  0xc8   : > { %287 = vst [vmem:[%s181_s22] sm:$0xff] %v264_v40 }
  0xc9   : > { %288 = vst [vmem:[%s181_s22 + $0x8] sm:$0xff] %v284_v41 }
  0xca PF: > { %s12_s11 = sadd.s32 1, %s443_s11   ;;  %s508_s9 = smov %s439_s10 }
  0xcb   : > { %p9_p5 = scmp.ge.s32.totalorder %s12_s11, 4   ;;  %s509_s10 = smov %s511_s12 }
  0xcd   :  { %11 = sbr.rel (!%p9_p5) target bundleno = 2 (0x2), region = 58 }

</bundles_post_ra>
